<compile_context>
chip_gen: v5e
topology: v5e:2x2
jax: 0.10.0
libtpu: 0.0.40
codegen_flags: <defaults>
</compile_context>

<pallas_src>
import functools
import math
from typing import NamedTuple, Optional

import jax
import jax.numpy as jnp
from jax.experimental import pallas as pl
from jax.experimental.pallas import tpu as pltpu

LN_EPS = 1e-5                     # torch.nn.LayerNorm default
_INV_SQRT2 = 1.0 / math.sqrt(2.0)
_SQRT_2_OVER_PI = math.sqrt(2.0 / math.pi)


def _round_up(v, m):
    return ((v + m - 1) // m) * m


def _vmem_cap_bytes():
    """Per-generation VMEM cap (85% of physical), 64 MiB fallback (safe on v7x)."""
    try:
        return int(0.85 * pltpu.get_tpu_info().vmem_capacity_bytes)
    except Exception:
        return 64 << 20


# ----------------------------------------------------------------------------- kernel


def _image_proj_kernel(x_ref, w1_ref, b1_ref, g_ref, beta_ref, w2_ref, b2_ref,
                       o_ref, *, hidden_real, exact_gelu):
    """One (tm, in_p) row tile through Linear -> GELU -> LayerNorm -> Linear."""
    # ---- Linear 1: MXU, native input dtype, f32 accumulation ----
    h = jnp.dot(x_ref[...], w1_ref[...], preferred_element_type=jnp.float32)
    h = h + b1_ref[...].astype(jnp.float32)

    # ---- GELU ----
    if exact_gelu:
        # Exact erf form == torch.nn.GELU() default (VALU polynomial, slower).
        h = 0.5 * h * (1.0 + jax.lax.erf(h * _INV_SQRT2))
    else:
        # tanh approximation: transcendental goes to the EUP slot, freeing the VALU.
        h = 0.5 * h * (1.0 + jnp.tanh(_SQRT_2_OVER_PI * (h + 0.044715 * h * h * h)))

    # ---- Dropout(p=0.0) == identity ----

    # ---- LayerNorm over the *real* hidden width ----
    # Padded hidden lanes of `h` are exactly 0 (zero w1 columns, zero b1 padding,
    # GELU(0)=0), so sums over the padded axis equal sums over the real axis; only
    # the divisor uses the real width.  Padded lanes of `hn` are zeroed by the
    # zero-padded gamma/beta (and the zero rows of w2 anyway).
    inv_n = 1.0 / float(hidden_real)
    mu = jnp.sum(h, axis=-1, keepdims=True) * inv_n
    ex2 = jnp.sum(h * h, axis=-1, keepdims=True) * inv_n
    var = jnp.maximum(ex2 - mu * mu, 0.0)
    hn = (h - mu) * jax.lax.rsqrt(var + LN_EPS)
    hn = hn * g_ref[...].astype(jnp.float32) + beta_ref[...].astype(jnp.float32)

    # ---- Linear 2: MXU (cast normalized acts back to the weight dtype) ----
    out = jnp.dot(hn.astype(w2_ref.dtype), w2_ref[...],
                  preferred_element_type=jnp.float32)
    out = out + b2_ref[...].astype(jnp.float32)

    # ---- Dropout(p=0.0) == identity ----
    o_ref[...] = out.astype(o_ref.dtype)


# --------------------------------------------------------------------- param prep


class ImageProjParams(NamedTuple):
    w1p: jax.Array     # (in_p, hid_p)
    b1p: jax.Array     # (1, hid_p)
    gp: jax.Array      # (1, hid_p)
    bp: jax.Array      # (1, hid_p)
    w2p: jax.Array     # (hid_p, out_p)
    b2p: jax.Array     # (1, out_p)
    in_dim: int
    hidden: int
    out_dim: int


def prepare_image_proj_params(w1, b1, gamma, beta, w2, b2,
                              compute_dtype: Optional[jnp.dtype] = None):
    """Pad weights to lane-dense (multiple-of-128) shapes ONCE.

    Weights are stored as (in_features, out_features), i.e. the transpose of the
    PyTorch nn.Linear weight, so y = x @ W + b matches torch semantics.
    compute_dtype=jnp.bfloat16 optionally casts the matmul operands for v6e/v7x
    MXU throughput (verify tolerance vs. torch before enabling).
    """
    in_dim, hidden = w1.shape
    out_dim = w2.shape[1]
    if compute_dtype is not None:
        w1 = w1.astype(compute_dtype)
        w2 = w2.astype(compute_dtype)

    in_p = _round_up(in_dim, 128)
    hid_p = _round_up(hidden, 128)
    out_p = _round_up(out_dim, 128)

    def _pad2(a, r, c):
        pr, pc = r - a.shape[0], c - a.shape[1]
        return jnp.pad(a, ((0, pr), (0, pc))) if (pr or pc) else a

    w1p = _pad2(w1, in_p, hid_p)
    w2p = _pad2(w2, hid_p, out_p)
    b1p = _pad2(b1.reshape(1, hidden), 1, hid_p)
    gp = _pad2(gamma.reshape(1, hidden), 1, hid_p)
    bp = _pad2(beta.reshape(1, hidden), 1, hid_p)
    b2p = _pad2(b2.reshape(1, out_dim), 1, out_p)
    return ImageProjParams(w1p, b1p, gp, bp, w2p, b2p, in_dim, hidden, out_dim)


def _pick_tm(M, hid_p):
    """Adaptive row tile: no 16x wasted MXU work for small batches; >=2 grid
    steps for large M (v7x megacore); shrink if f32 intermediates are too big."""
    m16 = _round_up(max(M, 1), 16)
    tm = min(256, m16)
    cap = _vmem_cap_bytes()
    # ~3 f32 intermediates of shape (tm, hid_p); keep them to <= 1/4 of VMEM.
    while tm > 16 and 3 * tm * hid_p * 4 > cap // 4:
        tm = _round_up(tm // 2, 16)
    return max(tm, 16)


# ------------------------------------------------------------------------ 2D driver


@functools.partial(
    jax.jit,
    static_argnames=("in_dim", "hidden", "out_dim", "tm",
                     "single_buffer_weights", "exact_gelu"))
def _image_proj_2d(x2, w1p, b1p, gp, bp, w2p, b2p, *, in_dim, hidden, out_dim,
                   tm, single_buffer_weights, exact_gelu):
    M = x2.shape[0]
    in_p, hid_p = w1p.shape
    out_p = w2p.shape[1]
    assert tm % 8 == 0, "row tile must be a multiple of 8 (use multiples of 16)"

    # Cast activations to the weight compute dtype (bf16 path) once, outside kernel.
    if x2.dtype != w1p.dtype:
        x2 = x2.astype(w1p.dtype)

    # Row padding to a multiple of tm + lane padding of the input features.
    m_p = _round_up(M, tm)
    if (m_p != M) or (in_p != in_dim):
        x2 = jnp.pad(x2, ((0, m_p - M), (0, in_p - in_dim)))

    # ---- VMEM budget: weights (+ buffering), param vectors, x/out tiles, and the
    # f32 intermediates (h, hn, cast copy, out acc).  Cap from the chip generation.
    w_isz = w1p.dtype.itemsize
    x_isz = x2.dtype.itemsize
    w_bufs = 1 if single_buffer_weights else 2
    p_bufs = 1 if single_buffer_weights else 2
    weight_bytes = (in_p * hid_p + hid_p * out_p) * w_isz * w_bufs
    param_bytes = p_bufs * (3 * hid_p + out_p) * 4
    tile_bytes = 2 * tm * (in_p + out_p) * x_isz
    interm_bytes = 3 * tm * hid_p * 4 + tm * out_p * 4
    vmem_limit = int(1.2 * (weight_bytes + param_bytes + tile_bytes + interm_bytes))
    vmem_limit += 4 << 20
    vmem_limit = min(max(vmem_limit, 16 << 20), _vmem_cap_bytes())

    # ---- Cost estimate (helps XLA schedule around the custom call) ----
    cost = pl.CostEstimate(
        flops=2 * m_p * (in_p * hid_p + hid_p * out_p) + 12 * m_p * hid_p,
        transcendentals=m_p * hid_p,
        bytes_accessed=(m_p * in_p * x_isz + m_p * out_p * x_isz
                        + (in_p * hid_p + hid_p * out_p) * w_isz
                        + (3 * hid_p + out_p) * 4),
    )

    # Grid-invariant inputs: single-buffer when supported (constant index_map).
    w_mode = pl.Buffered(buffer_count=1) if single_buffer_weights else None

    def _const_spec(shape):
        if w_mode is None:
            return pl.BlockSpec(shape, lambda i: (0, 0))
        return pl.BlockSpec(shape, lambda i: (0, 0), pipeline_mode=w_mode)

    kernel = functools.partial(_image_proj_kernel, hidden_real=hidden,
                               exact_gelu=exact_gelu)

    out = pl.pallas_call(
        kernel,
        out_shape=jax.ShapeDtypeStruct((m_p, out_p), x2.dtype),
        grid_spec=pltpu.PrefetchScalarGridSpec(
            num_scalar_prefetch=0,
            grid=(m_p // tm,),
            in_specs=[
                pl.BlockSpec((tm, in_p), lambda i: (i, 0)),   # x tile (pipelined)
                _const_spec((in_p, hid_p)),                   # w1
                _const_spec((1, hid_p)),                      # b1
                _const_spec((1, hid_p)),                      # gamma
                _const_spec((1, hid_p)),                      # beta
                _const_spec((hid_p, out_p)),                  # w2
                _const_spec((1, out_p)),                      # b2
            ],
            out_specs=pl.BlockSpec((tm, out_p), lambda i: (i, 0)),
        ),
        compiler_params=pltpu.CompilerParams(
            dimension_semantics=("parallel",),
            vmem_limit_bytes=vmem_limit,
        ),
        cost_estimate=cost,
    )(x2, w1p, b1p, gp, bp, w2p, b2p)

    return out[:M, :out_dim]


# --------------------------------------------------------------------------- wrapper


def image_proj_model_s(x, params: ImageProjParams, *, tm=None, exact_gelu=False):
    """x: (..., in_dim) -> (..., out_dim) using pre-padded params."""
    lead = x.shape[:-1]
    x2 = x.reshape(-1, x.shape[-1])
    M = x2.shape[0]
    if tm is None:
        tm = _pick_tm(M, params.w1p.shape[1])

    kwargs = dict(in_dim=params.in_dim, hidden=params.hidden,
                  out_dim=params.out_dim, tm=tm, exact_gelu=exact_gelu)
    arrays = (x2, params.w1p, params.b1p, params.gp, params.bp,
              params.w2p, params.b2p)
    try:
        out2 = _image_proj_2d(*arrays, single_buffer_weights=True, **kwargs)
    except Exception:
        # Builds that reject pl.Buffered(1) / pipeline_mode fall back to default
        # double-buffering; a genuine error re-raises from this second attempt.
        out2 = _image_proj_2d(*arrays, single_buffer_weights=False, **kwargs)
    return out2.reshape(*lead, out2.shape[-1])


# ------------------------------------------------------------------------- reference


def _reference(x, w1, b1, gamma, beta, w2, b2):
    """Pure-JAX reference with torch semantics (exact-erf GELU, f32 LayerNorm)."""
    h = x @ w1 + b1
    h = 0.5 * h * (1.0 + jax.lax.erf(h * _INV_SQRT2))
    mu = jnp.mean(h, axis=-1, keepdims=True)
    var = jnp.mean((h - mu) ** 2, axis=-1, keepdims=True)
    hn = (h - mu) / jnp.sqrt(var + LN_EPS)
    hn = hn * gamma + beta
    return hn @ w2 + b2


if __name__ == "__main__":
    # Small shapes consistent with the forward: x is (batch, seq, in_dim).
    batch, seq = 2, 8
    in_dim, hidden_dim, out_dim = 32, 64, 32

    key = jax.random.PRNGKey(0)
    kx, kw1, kb1, kw2, kb2 = jax.random.split(key, 5)

    x = jax.random.normal(kx, (batch, seq, in_dim), dtype=jnp.float32)

    # Deterministic synthetic parameters (PyTorch stores Linear weight as (out, in);
    # we keep the (in, out) transpose so y = x W + b matches y = x W_torch^T + b).
    lim1 = 1.0 / math.sqrt(in_dim)
    w1 = jax.random.uniform(kw1, (in_dim, hidden_dim), jnp.float32, -lim1, lim1)
    b1 = jax.random.uniform(kb1, (hidden_dim,), jnp.float32, -lim1, lim1)
    gamma = jnp.ones((hidden_dim,), jnp.float32)   # LayerNorm weight init
    beta = jnp.zeros((hidden_dim,), jnp.float32)   # LayerNorm bias init
    lim2 = 1.0 / math.sqrt(hidden_dim)
    w2 = jax.random.uniform(kw2, (hidden_dim, out_dim), jnp.float32, -lim2, lim2)
    b2 = jax.random.uniform(kb2, (out_dim,), jnp.float32, -lim2, lim2)

    # Pad / stage the weights ONCE (perf: no per-call weight HBM rewrite).
    params = prepare_image_proj_params(w1, b1, gamma, beta, w2, b2)

    # Exact-erf path (bit-matches torch.nn.GELU() semantics).
    out_exact = image_proj_model_s(x, params, exact_gelu=True)
    # Default fast path (tanh-GELU on the EUP slot).
    out_fast = image_proj_model_s(x, params)
    jax.block_until_ready((out_exact, out_fast))

    ref = _reference(x.reshape(-1, in_dim), w1, b1, gamma, beta, w2, b2)
    ref = ref.reshape(batch, seq, out_dim)

    assert out_exact.shape == (batch, seq, out_dim)
    assert out_fast.shape == (batch, seq, out_dim)
    assert jnp.allclose(out_exact, ref, atol=2e-5, rtol=2e-5), "exact-GELU mismatch"
    # tanh-GELU is a <~1e-3 approximation of torch's exact GELU.
    assert jnp.allclose(out_fast, ref, atol=5e-3, rtol=1e-2), "tanh-GELU mismatch"

    print("KERNEL_OK")
</pallas_src>

<mosaic_0001>
module attributes {stable_mosaic.version = 11 : i64} {
  func.func @_image_proj_kernel(%arg0: i32, %arg1: memref<16x128xf32, #tpu.memory_space<vmem>>, %arg2: memref<128x128xf32, #tpu.memory_space<vmem>>, %arg3: memref<1x128xf32, #tpu.memory_space<vmem>>, %arg4: memref<1x128xf32, #tpu.memory_space<vmem>>, %arg5: memref<1x128xf32, #tpu.memory_space<vmem>>, %arg6: memref<128x128xf32, #tpu.memory_space<vmem>>, %arg7: memref<1x128xf32, #tpu.memory_space<vmem>>, %arg8: memref<16x128xf32, #tpu.memory_space<vmem>>) attributes {dimension_semantics = [#tpu.dimension_semantics<parallel>], iteration_bounds = array<i64: 1>, scalar_prefetch = 0 : i64, scratch_operands = 0 : i64, tpu.core_type = #tpu.core_type<tc>, window_params = [{transform_indices = @transform_0, window_bounds = array<i64: 16, 128>}, {pipeline_mode = #tpu.pipeline_mode<synchronous>, transform_indices = @transform_1, window_bounds = array<i64: 128, 128>}, {pipeline_mode = #tpu.pipeline_mode<synchronous>, transform_indices = @transform_2, window_bounds = array<i64: 1, 128>}, {pipeline_mode = #tpu.pipeline_mode<synchronous>, transform_indices = @transform_3, window_bounds = array<i64: 1, 128>}, {pipeline_mode = #tpu.pipeline_mode<synchronous>, transform_indices = @transform_4, window_bounds = array<i64: 1, 128>}, {pipeline_mode = #tpu.pipeline_mode<synchronous>, transform_indices = @transform_5, window_bounds = array<i64: 128, 128>}, {pipeline_mode = #tpu.pipeline_mode<synchronous>, transform_indices = @transform_6, window_bounds = array<i64: 1, 128>}, {transform_indices = @transform_7, window_bounds = array<i64: 16, 128>}]} {
    %c0 = arith.constant 0 : index
    %c0_0 = arith.constant 0 : index
    %0 = vector.load %arg1[%c0, %c0_0] : memref<16x128xf32, #tpu.memory_space<vmem>>, vector<16x128xf32>
    %c0_1 = arith.constant 0 : index
    %c0_2 = arith.constant 0 : index
    %1 = vector.load %arg2[%c0_1, %c0_2] : memref<128x128xf32, #tpu.memory_space<vmem>>, vector<128x128xf32>
    %cst = arith.constant dense<0.000000e+00> : vector<16x128xf32>
    %2 = tpu.matmul %0, %1, %cst {dimension_numbers = #tpu.dot_dimension_numbers<[1], [0], [0], [1], [0, 0, 1, 1], [], []>} : vector<16x128xf32>, vector<128x128xf32>, vector<16x128xf32> -> vector<16x128xf32>
    %c0_3 = arith.constant 0 : index
    %c0_4 = arith.constant 0 : index
    %3 = vector.load %arg3[%c0_3, %c0_4] : memref<1x128xf32, #tpu.memory_space<vmem>>, vector<1x128xf32>
    %4 = vector.broadcast %3 : vector<1x128xf32> to vector<16x128xf32>
    %5 = arith.addf %2, %4 : vector<16x128xf32>
    %cst_5 = arith.constant 5.000000e-01 : f32
    %6 = vector.broadcast %cst_5 : f32 to vector<16x128xf32>
    %7 = arith.mulf %6, %5 : vector<16x128xf32>
    %cst_6 = arith.constant 0.707106769 : f32
    %8 = vector.broadcast %cst_6 : f32 to vector<16x128xf32>
    %9 = arith.mulf %5, %8 : vector<16x128xf32>
    %10 = math.erf %9 : vector<16x128xf32>
    %cst_7 = arith.constant 1.000000e+00 : f32
    %11 = vector.broadcast %cst_7 : f32 to vector<16x128xf32>
    %12 = arith.addf %11, %10 : vector<16x128xf32>
    %13 = arith.mulf %7, %12 : vector<16x128xf32>
    %cst_8 = arith.constant dense<0.000000e+00> : vector<16xf32>
    %14 = vector.multi_reduction <add>, %13, %cst_8 [1] : vector<16x128xf32> to vector<16xf32>
    %15 = vector.shape_cast %14 : vector<16xf32> to vector<16x1xf32>
    %cst_9 = arith.constant 1.562500e-02 : f32
    %16 = vector.broadcast %cst_9 : f32 to vector<16x1xf32>
    %17 = arith.mulf %15, %16 : vector<16x1xf32>
    %18 = arith.mulf %13, %13 : vector<16x128xf32>
    %cst_10 = arith.constant dense<0.000000e+00> : vector<16xf32>
    %19 = vector.multi_reduction <add>, %18, %cst_10 [1] : vector<16x128xf32> to vector<16xf32>
    %20 = vector.shape_cast %19 : vector<16xf32> to vector<16x1xf32>
    %cst_11 = arith.constant 1.562500e-02 : f32
    %21 = vector.broadcast %cst_11 : f32 to vector<16x1xf32>
    %22 = arith.mulf %20, %21 : vector<16x1xf32>
    %23 = arith.mulf %17, %17 : vector<16x1xf32>
    %24 = arith.subf %22, %23 : vector<16x1xf32>
    %cst_12 = arith.constant 0.000000e+00 : f32
    %25 = vector.broadcast %cst_12 : f32 to vector<16x1xf32>
    %26 = arith.maximumf %24, %25 : vector<16x1xf32>
    %27 = vector.broadcast %17 : vector<16x1xf32> to vector<16x128xf32>
    %28 = arith.subf %13, %27 : vector<16x128xf32>
    %cst_13 = arith.constant 9.99999974E-6 : f32
    %29 = vector.broadcast %cst_13 : f32 to vector<16x1xf32>
    %30 = arith.addf %26, %29 : vector<16x1xf32>
    %31 = math.rsqrt %30 : vector<16x1xf32>
    %32 = vector.broadcast %31 : vector<16x1xf32> to vector<16x128xf32>
    %33 = arith.mulf %28, %32 : vector<16x128xf32>
    %c0_14 = arith.constant 0 : index
    %c0_15 = arith.constant 0 : index
    %34 = vector.load %arg4[%c0_14, %c0_15] : memref<1x128xf32, #tpu.memory_space<vmem>>, vector<1x128xf32>
    %35 = vector.broadcast %34 : vector<1x128xf32> to vector<16x128xf32>
    %36 = arith.mulf %33, %35 : vector<16x128xf32>
    %c0_16 = arith.constant 0 : index
    %c0_17 = arith.constant 0 : index
    %37 = vector.load %arg5[%c0_16, %c0_17] : memref<1x128xf32, #tpu.memory_space<vmem>>, vector<1x128xf32>
    %38 = vector.broadcast %37 : vector<1x128xf32> to vector<16x128xf32>
    %39 = arith.addf %36, %38 : vector<16x128xf32>
    %c0_18 = arith.constant 0 : index
    %c0_19 = arith.constant 0 : index
    %40 = vector.load %arg6[%c0_18, %c0_19] : memref<128x128xf32, #tpu.memory_space<vmem>>, vector<128x128xf32>
    %cst_20 = arith.constant dense<0.000000e+00> : vector<16x128xf32>
    %41 = tpu.matmul %39, %40, %cst_20 {dimension_numbers = #tpu.dot_dimension_numbers<[1], [0], [0], [1], [0, 0, 1, 1], [], []>} : vector<16x128xf32>, vector<128x128xf32>, vector<16x128xf32> -> vector<16x128xf32>
    %c0_21 = arith.constant 0 : index
    %c0_22 = arith.constant 0 : index
    %42 = vector.load %arg7[%c0_21, %c0_22] : memref<1x128xf32, #tpu.memory_space<vmem>>, vector<1x128xf32>
    %43 = vector.broadcast %42 : vector<1x128xf32> to vector<16x128xf32>
    %44 = arith.addf %41, %43 : vector<16x128xf32>
    %c0_23 = arith.constant 0 : index
    %c0_24 = arith.constant 0 : index
    %45 = vector.load %arg8[%c0_23, %c0_24] : memref<16x128xf32, #tpu.memory_space<vmem>>, vector<16x128xf32>
    tpu.vector_store %arg8[%c0_23, %c0_24], %44 {strides = array<i32>} : memref<16x128xf32, #tpu.memory_space<vmem>>, vector<16x128xf32>,
    return
  }
  func.func @transform_0(%arg0: i32) -> (i32, i32) {
    %c0_i32 = arith.constant 0 : i32
    %c0_i32_0 = arith.constant 0 : i32
    return %arg0, %c0_i32 : i32, i32
  }
  func.func @transform_1(%arg0: i32) -> (i32, i32) {
    %c0_i32 = arith.constant 0 : i32
    %c0_i32_0 = arith.constant 0 : i32
    %c0_i32_1 = arith.constant 0 : i32
    return %c0_i32, %c0_i32_0 : i32, i32
  }
  func.func @transform_2(%arg0: i32) -> (i32, i32) {
    %c0_i32 = arith.constant 0 : i32
    %c0_i32_0 = arith.constant 0 : i32
    %c0_i32_1 = arith.constant 0 : i32
    return %c0_i32, %c0_i32_0 : i32, i32
  }
  func.func @transform_3(%arg0: i32) -> (i32, i32) {
    %c0_i32 = arith.constant 0 : i32
    %c0_i32_0 = arith.constant 0 : i32
    %c0_i32_1 = arith.constant 0 : i32
    return %c0_i32, %c0_i32_0 : i32, i32
  }
  func.func @transform_4(%arg0: i32) -> (i32, i32) {
    %c0_i32 = arith.constant 0 : i32
    %c0_i32_0 = arith.constant 0 : i32
    %c0_i32_1 = arith.constant 0 : i32
    return %c0_i32, %c0_i32_0 : i32, i32
  }
  func.func @transform_5(%arg0: i32) -> (i32, i32) {
    %c0_i32 = arith.constant 0 : i32
    %c0_i32_0 = arith.constant 0 : i32
    %c0_i32_1 = arith.constant 0 : i32
    return %c0_i32, %c0_i32_0 : i32, i32
  }
  func.func @transform_6(%arg0: i32) -> (i32, i32) {
    %c0_i32 = arith.constant 0 : i32
    %c0_i32_0 = arith.constant 0 : i32
    %c0_i32_1 = arith.constant 0 : i32
    return %c0_i32, %c0_i32_0 : i32, i32
  }
  func.func @transform_7(%arg0: i32) -> (i32, i32) {
    %c0_i32 = arith.constant 0 : i32
    %c0_i32_0 = arith.constant 0 : i32
    return %arg0, %c0_i32 : i32, i32
  }
}

module attributes {stable_mosaic.version = 11 : i64} {
  func.func @_image_proj_kernel(%arg0: i32, %arg1: memref<16x128xf32, #tpu.memory_space<vmem>>, %arg2: memref<128x128xf32, #tpu.memory_space<vmem>>, %arg3: memref<1x128xf32, #tpu.memory_space<vmem>>, %arg4: memref<1x128xf32, #tpu.memory_space<vmem>>, %arg5: memref<1x128xf32, #tpu.memory_space<vmem>>, %arg6: memref<128x128xf32, #tpu.memory_space<vmem>>, %arg7: memref<1x128xf32, #tpu.memory_space<vmem>>, %arg8: memref<16x128xf32, #tpu.memory_space<vmem>>) attributes {dimension_semantics = [#tpu.dimension_semantics<parallel>], iteration_bounds = array<i64: 1>, scalar_prefetch = 0 : i64, scratch_operands = 0 : i64, tpu.core_type = #tpu.core_type<tc>, window_params = [{transform_indices = @transform_0, window_bounds = array<i64: 16, 128>}, {pipeline_mode = #tpu.pipeline_mode<synchronous>, transform_indices = @transform_1, window_bounds = array<i64: 128, 128>}, {pipeline_mode = #tpu.pipeline_mode<synchronous>, transform_indices = @transform_2, window_bounds = array<i64: 1, 128>}, {pipeline_mode = #tpu.pipeline_mode<synchronous>, transform_indices = @transform_3, window_bounds = array<i64: 1, 128>}, {pipeline_mode = #tpu.pipeline_mode<synchronous>, transform_indices = @transform_4, window_bounds = array<i64: 1, 128>}, {pipeline_mode = #tpu.pipeline_mode<synchronous>, transform_indices = @transform_5, window_bounds = array<i64: 128, 128>}, {pipeline_mode = #tpu.pipeline_mode<synchronous>, transform_indices = @transform_6, window_bounds = array<i64: 1, 128>}, {transform_indices = @transform_7, window_bounds = array<i64: 16, 128>}]} {
    %c0 = arith.constant 0 : index
    %c0_0 = arith.constant 0 : index
    %0 = vector.load %arg1[%c0, %c0_0] : memref<16x128xf32, #tpu.memory_space<vmem>>, vector<16x128xf32>
    %c0_1 = arith.constant 0 : index
    %c0_2 = arith.constant 0 : index
    %1 = vector.load %arg2[%c0_1, %c0_2] : memref<128x128xf32, #tpu.memory_space<vmem>>, vector<128x128xf32>
    %cst = arith.constant dense<0.000000e+00> : vector<16x128xf32>
    %2 = tpu.matmul %0, %1, %cst {dimension_numbers = #tpu.dot_dimension_numbers<[1], [0], [0], [1], [0, 0, 1, 1], [], []>} : vector<16x128xf32>, vector<128x128xf32>, vector<16x128xf32> -> vector<16x128xf32>
    %c0_3 = arith.constant 0 : index
    %c0_4 = arith.constant 0 : index
    %3 = vector.load %arg3[%c0_3, %c0_4] : memref<1x128xf32, #tpu.memory_space<vmem>>, vector<1x128xf32>
    %4 = vector.broadcast %3 : vector<1x128xf32> to vector<16x128xf32>
    %5 = arith.addf %2, %4 : vector<16x128xf32>
    %cst_5 = arith.constant 5.000000e-01 : f32
    %6 = vector.broadcast %cst_5 : f32 to vector<16x128xf32>
    %7 = arith.mulf %6, %5 : vector<16x128xf32>
    %cst_6 = arith.constant 0.707106769 : f32
    %8 = vector.broadcast %cst_6 : f32 to vector<16x128xf32>
    %9 = arith.mulf %5, %8 : vector<16x128xf32>
    %10 = math.erf %9 : vector<16x128xf32>
    %cst_7 = arith.constant 1.000000e+00 : f32
    %11 = vector.broadcast %cst_7 : f32 to vector<16x128xf32>
    %12 = arith.addf %11, %10 : vector<16x128xf32>
    %13 = arith.mulf %7, %12 : vector<16x128xf32>
    %cst_8 = arith.constant dense<0.000000e+00> : vector<16xf32>
    %14 = vector.multi_reduction <add>, %13, %cst_8 [1] : vector<16x128xf32> to vector<16xf32>
    %15 = vector.shape_cast %14 : vector<16xf32> to vector<16x1xf32>
    %cst_9 = arith.constant 1.562500e-02 : f32
    %16 = vector.broadcast %cst_9 : f32 to vector<16x1xf32>
    %17 = arith.mulf %15, %16 : vector<16x1xf32>
    %18 = arith.mulf %13, %13 : vector<16x128xf32>
    %cst_10 = arith.constant dense<0.000000e+00> : vector<16xf32>
    %19 = vector.multi_reduction <add>, %18, %cst_10 [1] : vector<16x128xf32> to vector<16xf32>
    %20 = vector.shape_cast %19 : vector<16xf32> to vector<16x1xf32>
    %cst_11 = arith.constant 1.562500e-02 : f32
    %21 = vector.broadcast %cst_11 : f32 to vector<16x1xf32>
    %22 = arith.mulf %20, %21 : vector<16x1xf32>
    %23 = arith.mulf %17, %17 : vector<16x1xf32>
    %24 = arith.subf %22, %23 : vector<16x1xf32>
    %cst_12 = arith.constant 0.000000e+00 : f32
    %25 = vector.broadcast %cst_12 : f32 to vector<16x1xf32>
    %26 = arith.maximumf %24, %25 : vector<16x1xf32>
    %27 = vector.broadcast %17 : vector<16x1xf32> to vector<16x128xf32>
    %28 = arith.subf %13, %27 : vector<16x128xf32>
    %cst_13 = arith.constant 9.99999974E-6 : f32
    %29 = vector.broadcast %cst_13 : f32 to vector<16x1xf32>
    %30 = arith.addf %26, %29 : vector<16x1xf32>
    %31 = math.rsqrt %30 : vector<16x1xf32>
    %32 = vector.broadcast %31 : vector<16x1xf32> to vector<16x128xf32>
    %33 = arith.mulf %28, %32 : vector<16x128xf32>
    %c0_14 = arith.constant 0 : index
    %c0_15 = arith.constant 0 : index
    %34 = vector.load %arg4[%c0_14, %c0_15] : memref<1x128xf32, #tpu.memory_space<vmem>>, vector<1x128xf32>
    %35 = vector.broadcast %34 : vector<1x128xf32> to vector<16x128xf32>
    %36 = arith.mulf %33, %35 : vector<16x128xf32>
    %c0_16 = arith.constant 0 : index
    %c0_17 = arith.constant 0 : index
    %37 = vector.load %arg5[%c0_16, %c0_17] : memref<1x128xf32, #tpu.memory_space<vmem>>, vector<1x128xf32>
    %38 = vector.broadcast %37 : vector<1x128xf32> to vector<16x128xf32>
    %39 = arith.addf %36, %38 : vector<16x128xf32>
    %c0_18 = arith.constant 0 : index
    %c0_19 = arith.constant 0 : index
    %40 = vector.load %arg6[%c0_18, %c0_19] : memref<128x128xf32, #tpu.memory_space<vmem>>, vector<128x128xf32>
    %cst_20 = arith.constant dense<0.000000e+00> : vector<16x128xf32>
    %41 = tpu.matmul %39, %40, %cst_20 {dimension_numbers = #tpu.dot_dimension_numbers<[1], [0], [0], [1], [0, 0, 1, 1], [], []>} : vector<16x128xf32>, vector<128x128xf32>, vector<16x128xf32> -> vector<16x128xf32>
    %c0_21 = arith.constant 0 : index
    %c0_22 = arith.constant 0 : index
    %42 = vector.load %arg7[%c0_21, %c0_22] : memref<1x128xf32, #tpu.memory_space<vmem>>, vector<1x128xf32>
    %43 = vector.broadcast %42 : vector<1x128xf32> to vector<16x128xf32>
    %44 = arith.addf %41, %43 : vector<16x128xf32>
    %c0_23 = arith.constant 0 : index
    %c0_24 = arith.constant 0 : index
    %45 = vector.load %arg8[%c0_23, %c0_24] : memref<16x128xf32, #tpu.memory_space<vmem>>, vector<16x128xf32>
    tpu.vector_store %arg8[%c0_23, %c0_24], %44 {strides = array<i32>} : memref<16x128xf32, #tpu.memory_space<vmem>>, vector<16x128xf32>,
    return
  }
  func.func @transform_0(%arg0: i32) -> (i32, i32) {
    %c0_i32 = arith.constant 0 : i32
    %c0_i32_0 = arith.constant 0 : i32
    return %arg0, %c0_i32 : i32, i32
  }
  func.func @transform_1(%arg0: i32) -> (i32, i32) {
    %c0_i32 = arith.constant 0 : i32
    %c0_i32_0 = arith.constant 0 : i32
    %c0_i32_1 = arith.constant 0 : i32
    return %c0_i32, %c0_i32_0 : i32, i32
  }
  func.func @transform_2(%arg0: i32) -> (i32, i32) {
    %c0_i32 = arith.constant 0 : i32
    %c0_i32_0 = arith.constant 0 : i32
    %c0_i32_1 = arith.constant 0 : i32
    return %c0_i32, %c0_i32_0 : i32, i32
  }
  func.func @transform_3(%arg0: i32) -> (i32, i32) {
    %c0_i32 = arith.constant 0 : i32
    %c0_i32_0 = arith.constant 0 : i32
    %c0_i32_1 = arith.constant 0 : i32
    return %c0_i32, %c0_i32_0 : i32, i32
  }
  func.func @transform_4(%arg0: i32) -> (i32, i32) {
    %c0_i32 = arith.constant 0 : i32
    %c0_i32_0 = arith.constant 0 : i32
    %c0_i32_1 = arith.constant 0 : i32
    return %c0_i32, %c0_i32_0 : i32, i32
  }
  func.func @transform_5(%arg0: i32) -> (i32, i32) {
    %c0_i32 = arith.constant 0 : i32
    %c0_i32_0 = arith.constant 0 : i32
    %c0_i32_1 = arith.constant 0 : i32
    return %c0_i32, %c0_i32_0 : i32, i32
  }
  func.func @transform_6(%arg0: i32) -> (i32, i32) {
    %c0_i32 = arith.constant 0 : i32
    %c0_i32_0 = arith.constant 0 : i32
    %c0_i32_1 = arith.constant 0 : i32
    return %c0_i32, %c0_i32_0 : i32, i32
  }
  func.func @transform_7(%arg0: i32) -> (i32, i32) {
    %c0_i32 = arith.constant 0 : i32
    %c0_i32_0 = arith.constant 0 : i32
    return %arg0, %c0_i32 : i32, i32
  }
}

</mosaic_0001>

<bundles_post_ra>
// kernel: _image_proj_2d.1
= control target key start
LH: loop header
LB: loop body
LE: loop exit
PB: predicated region body
PF: predicated region fallthrough
CT: control target
= control target key end

     0   :  { %12 = vsyncpa [#allocation3], 0  ;;  %s550_s0 = inlined_call_operand.vmem [shape: f32[16,128], index: 0, kind: input, shape index: {}]   ;;  %s551_s1 = inlined_call_operand.hbm [shape: f32[128,128], index: 1, kind: input, shape index: {}]   ;;  %s552_s2 = inlined_call_operand.vmem [shape: f32[1,128], index: 2, kind: input, shape index: {}]   ;;  %s553_s3 = inlined_call_operand.vmem [shape: f32[1,128], index: 3, kind: input, shape index: {}]   ;;  %s554_s4 = inlined_call_operand.vmem [shape: f32[1,128], index: 4, kind: input, shape index: {}]   ;;  %s555_s5 = inlined_call_operand.hbm [shape: f32[128,128], index: 5, kind: input, shape index: {}]   ;;  %s556_s6 = inlined_call_operand.vmem [shape: f32[1,128], index: 6, kind: input, shape index: {}]   ;;  %s557_s7 = inlined_call_operand.hbm [shape: f32[16,128], index: 7, kind: output, shape index: {}]  }
   0x1   :  { %13 = vsyncpa [#allocation6], 0 }
   0x2   :  { %14 = vsyncpa [#allocation4], 0  ;;  %s21_s26 = sshll.u32 %s551_s1, 4  ;;  %s444_s27 = smov [#allocation2]   ;;  %s22_s26 = int_to_ptr.hbm [resolvable:$true] %s21_s26 }
   0x3   :  { %s23_s28 = sshll.u32 %s444_s27, 4  ;;  %s40_s8 = sshll.u32 %s555_s5, 4  ;;  %s24_s28 = int_to_ptr.vmem [resolvable:$true] %s23_s28  ;;  %s41_s8 = int_to_ptr.hbm [resolvable:$true] %s40_s8 }
   0x4   :  { %s445_s9 = smov 128   ;;  %s446_s10 = smov 8  }
   0x5   :  { %29 = dma.hbm_to_vmem [thread:$0]  %s22_s26, 2048, %s24_s28, [#allocation3], %s445_s9, %s445_s9, %s446_s10  }
   0x6   :  { %s447_s11 = smov [#allocation5]  }
   0x7   :  { %s42_s12 = sshll.u32 %s447_s11, 4  ;;  %s43_s12 = int_to_ptr.vmem [resolvable:$true] %s42_s12 }
   0x8   :  { %48 = dma.hbm_to_vmem [thread:$0]  %s41_s8, 2048, %s43_s12, [#allocation6], %s445_s9, %s445_s9, %s446_s10  }
   0x9   :  { %438 = dma.done.wait [#allocation3], 2048  }
   0xa   :  { %439 = vsyncadd [#allocation3], 4294965248 }
   0xb   :  { %440 = dma.done.wait [#allocation6], 2048  }
   0xc   :  { %441 = vsyncadd [#allocation6], 4294965248  ;;  %v76_v0 = vld [vmem:[#allocation2 + $0x78] sm:$0xff]  ;;  %v75_v1 = vld [vmem:[#allocation2 + $0x70] sm:$0xff]  ;;  %s301_s23 = sshll.u32 %s557_s7, 4  ;;  %s302_s23 = int_to_ptr.hbm [resolvable:$true] %s301_s23 }
   0xd   :  { %81 = vmatpush.msra.mxu0 %v76_v0  ;;  %317 = vmatpush.msra.mxu2 %v76_v0  ;;  %v74_v2 = vld [vmem:[#allocation2 + $0x68] sm:$0xff]  ;;  %v73_v3 = vld [vmem:[#allocation2 + $0x60] sm:$0xff]  ;;  %v72_v4 = vld [vmem:[#allocation2 + $0x58] sm:$0xff] }
   0xe   :  { %v71_v5 = vld [vmem:[#allocation2 + $0x50] sm:$0xff]  ;;  %v70_v6 = vld [vmem:[#allocation2 + $0x48] sm:$0xff]  ;;  %v69_v7 = vld [vmem:[#allocation2 + $0x40] sm:$0xff] }
   0xf   :  { %82 = vmatpush.msra.mxu0 %v75_v1  ;;  %318 = vmatpush.msra.mxu2 %v75_v1  ;;  %v68_v8 = vld [vmem:[#allocation2 + $0x38] sm:$0xff]  ;;  %v67_v9 = vld [vmem:[#allocation2 + $0x30] sm:$0xff]  ;;  %v66_v10 = vld [vmem:[#allocation2 + $0x28] sm:$0xff] }
  0x10   :  { %v65_v11 = vld [vmem:[#allocation2 + $0x20] sm:$0xff]  ;;  %v64_v12 = vld [vmem:[#allocation2 + $0x18] sm:$0xff]  ;;  %v63_v13 = vld [vmem:[#allocation2 + $0x10] sm:$0xff] }
  0x11   :  { %83 = vmatpush.msra.mxu0 %v74_v2  ;;  %319 = vmatpush.msra.mxu2 %v74_v2  ;;  %v62_v14 = vld [vmem:[#allocation2 + $0x8] sm:$0xff]  ;;  %v61_v15 = vld [vmem:[#allocation2] sm:$0xff] }
  0x12   :  { %v59_v16 = vld [vmem:[%s550_s0] sm:$0xff]  ;;  %v60_v17 = vld [vmem:[%s550_s0 + $0x8] sm:$0xff] }
  0x13   :  { %84 = vmatpush.msra.mxu0 %v73_v3  ;;  %320 = vmatpush.msra.mxu2 %v73_v3  ;;  %v354_v18 = vld [vmem:[%s552_s2] ss:$0 sm:$0xff] }
  0x15   :  { %85 = vmatpush.msra.mxu0 %v72_v4  ;;  %321 = vmatpush.msra.mxu2 %v72_v4 }
  0x17   :  { %86 = vmatpush.msra.mxu0 %v71_v5  ;;  %322 = vmatpush.msra.mxu2 %v71_v5 }
  0x19   :  { %87 = vmatpush.msra.mxu0 %v70_v6  ;;  %323 = vmatpush.msra.mxu2 %v70_v6 }
  0x1b   :  { %88 = vmatpush.msra.mxu0 %v69_v7  ;;  %324 = vmatpush.msra.mxu2 %v69_v7 }
  0x1d   :  { %89 = vmatpush.msra.mxu0 %v68_v8  ;;  %325 = vmatpush.msra.mxu2 %v68_v8 }
  0x1f   :  { %90 = vmatpush.msra.mxu0 %v67_v9  ;;  %326 = vmatpush.msra.mxu2 %v67_v9 }
  0x21   :  { %91 = vmatpush.msra.mxu0 %v66_v10  ;;  %327 = vmatpush.msra.mxu2 %v66_v10 }
  0x23   :  { %92 = vmatpush.msra.mxu0 %v65_v11  ;;  %328 = vmatpush.msra.mxu2 %v65_v11 }
  0x25   :  { %93 = vmatpush.msra.mxu0 %v64_v12  ;;  %329 = vmatpush.msra.mxu2 %v64_v12 }
  0x27   :  { %94 = vmatpush.msra.mxu0 %v63_v13  ;;  %330 = vmatpush.msra.mxu2 %v63_v13 }
  0x29   :  { %95 = vmatpush.msra.mxu0 %v62_v14  ;;  %331 = vmatpush.msra.mxu2 %v62_v14 }
  0x2b   :  { %96 = vmatpush.msra.mxu0 %v61_v15  ;;  %332 = vmatpush.msra.mxu2 %v61_v15 }
  0x2c   :  { %97 = vmatmul.f32.vlgmr.msra.gmra.mxu0 %v59_v16  ;;  %100 = vmatmul.f32.vlgmr.msra.gmra.mxu2 %v60_v17 }
  0xa9   :  { %v98_v19 = vpop.f32.mrf.mxu0 }
  0xaa   :  { %v510_v20 = vadd.f32 %v354_v18, %v98_v19 }
  0xac   :  { %v106_v21 = vmul.f32 0.70710677, %v510_v20 }
  0xae   :  { %v108_v22 = vmul.f32 %v106_v21, %v106_v21 }
  0xaf   :  { %v101_v23 = vpop.f32.mrf.mxu2 }
  0xb0   :  { %v109_v24 = vmin.f32 %v108_v22, 16.0  ;;  %v513_v25 = vadd.f32 %v354_v18, %v101_v23 }
  0xb2   :  { %v110_v26 = vmul.f32 2.1237322e-06, %v109_v24  ;;  %v121_v27 = vmul.f32 3.8918573e-05, %v109_v24  ;;  %v516_v28 = vmul.f32 0.70710677, %v513_v25 }
  0xb4   :  { %v111_v29 = vadd.f32 0.00028619796, %v110_v26  ;;  %v122_v30 = vadd.f32 0.001143296, %v121_v27  ;;  %v148_v31 = vmul.f32 %v516_v28, %v516_v28 }
  0xb6   :  { %v112_v32 = vmul.f32 %v111_v29, %v109_v24  ;;  %v123_v33 = vmul.f32 %v122_v30, %v109_v24  ;;  %v149_v34 = vmin.f32 %v148_v31, 16.0  ;;  %v104_v29 = vmul.f32 0.5, %v510_v20 }
  0xb8   :  { %v124_v35 = vadd.f32 0.014752088, %v123_v33  ;;  %v113_v36 = vadd.f32 0.0036580483, %v112_v32  ;;  %v150_v37 = vmul.f32 2.1237322e-06, %v149_v34 }
  0xb9   :  { %v161_v38 = vmul.f32 3.8918573e-05, %v149_v34 }
  0xba   :  { %v125_v39 = vmul.f32 %v124_v35, %v109_v24  ;;  %v151_v40 = vadd.f32 0.00028619796, %v150_v37  ;;  %v114_v43 = vmul.f32 %v113_v36, %v109_v24  ;;  %v105_v37 = vmul.f32 0.5, %v513_v25  ;;  %v263_v25 = vld [vmem:[#allocation5 + $0x68] sm:$0xff] }
  0xbb   :  { %v162_v41 = vadd.f32 0.001143296, %v161_v38 }
  0xbc   :  { %v126_v42 = vadd.f32 0.112945676, %v125_v39  ;;  %v152_v44 = vmul.f32 %v151_v40, %v149_v34  ;;  %v115_v50 = vadd.f32 0.05243302, %v114_v43  ;;  %v265_v40 = vld [vmem:[#allocation5 + $0x78] sm:$0xff] }
  0xbd   :  { %v163_v45 = vmul.f32 %v162_v41, %v149_v34  ;;  %270 = vmatpush.msra.mxu1 %v265_v40  ;;  %333 = vmatpush.msra.mxu3 %v265_v40  ;;  %v264_v41 = vld [vmem:[#allocation5 + $0x70] sm:$0xff]  ;;  %v261_v43 = vld [vmem:[#allocation5 + $0x58] sm:$0xff] }
  0xbe   :  { %v127_v46 = vmul.f32 %v126_v42, %v109_v24  ;;  %v153_v49 = vadd.f32 0.0036580483, %v152_v44  ;;  %v116_v56 = vmul.f32 %v115_v50, %v109_v24  ;;  %v262_v42 = vld [vmem:[#allocation5 + $0x60] sm:$0xff]  ;;  %v260_v44 = vld [vmem:[#allocation5 + $0x50] sm:$0xff] }
  0xbf   :  { %v164_v47 = vadd.f32 0.014752088, %v163_v45  ;;  %271 = vmatpush.msra.mxu1 %v264_v41  ;;  %334 = vmatpush.msra.mxu3 %v264_v41  ;;  %v259_v45 = vld [vmem:[#allocation5 + $0x48] sm:$0xff] }
  0xc0   :  { %v128_v48 = vadd.f32 0.4994258, %v127_v46  ;;  %v154_v55 = vmul.f32 %v153_v49, %v149_v34  ;;  %v117_v60 = vadd.f32 0.18741608, %v116_v56  ;;  %v258_v46 = vld [vmem:[#allocation5 + $0x40] sm:$0xff]  ;;  %v255_v49 = vld [vmem:[#allocation5 + $0x28] sm:$0xff] }
  0xc1   :  { %v165_v51 = vmul.f32 %v164_v47, %v149_v34  ;;  %272 = vmatpush.msra.mxu1 %v263_v25  ;;  %335 = vmatpush.msra.mxu3 %v263_v25  ;;  %v257_v47 = vld [vmem:[#allocation5 + $0x38] sm:$0xff] }
  0xc2   :  { %v129_v52 = vmul.f32 %v128_v48, %v109_v24  ;;  %v155_v59 = vadd.f32 0.05243302, %v154_v55  ;;  %v118_v1 = vmul.f32 %v117_v60, %v109_v24  ;;  %v256_v48 = vld [vmem:[#allocation5 + $0x30] sm:$0xff]  ;;  %v251_v55 = vld [vmem:[#allocation5 + $0x8] sm:$0xff] }
  0xc3   :  { %v166_v53 = vadd.f32 0.112945676, %v165_v51  ;;  %273 = vmatpush.msra.mxu1 %v262_v42  ;;  %336 = vmatpush.msra.mxu3 %v262_v42  ;;  %v254_v51 = vld [vmem:[#allocation5 + $0x20] sm:$0xff] }
  0xc4   :  { %v130_v54 = vadd.f32 1.0, %v129_v52  ;;  %v156_v0 = vmul.f32 %v155_v59, %v149_v34  ;;  %v119_v6 = vadd.f32 1.1283791, %v118_v1  ;;  %v253_v52 = vld [vmem:[#allocation5 + $0x18] sm:$0xff] }
  0xc5   :  { %v167_v57 = vmul.f32 %v166_v53, %v149_v34  ;;  %274 = vmatpush.msra.mxu1 %v261_v43  ;;  %337 = vmatpush.msra.mxu3 %v261_v43 }
  0xc6   :  { %358 = vrcp.f32 %v130_v54  ;;  %v142_v4 = vand.u32 2147483648, %v130_v54  ;;  %v157_v5 = vadd.f32 0.18741608, %v156_v0  ;;  %v140_v8 = vand.u32 2147483647, %v130_v54 }
  0xc7   :  { %v168_v58 = vadd.f32 0.4994258, %v167_v57  ;;  %vm136_vm1 = vweird.f32 %v130_v54  ;;  %v120_v14 = vmul.f32 %v119_v6, %v106_v21  ;;  %275 = vmatpush.msra.mxu1 %v260_v44  ;;  %338 = vmatpush.msra.mxu3 %v260_v44  ;;  %v250_v57 = vld [vmem:[#allocation5] sm:$0xff] }
  0xc8   :  { %v143_v11 = vor.u32 1.1754944e-38, %v142_v4  ;;  %v158_v12 = vmul.f32 %v157_v5, %v149_v34  ;;  %vm141_vm3 = vcmp.eq.f32.partialorder %v140_v8, 8.507059e+37 }
  0xc9   :  { %v169_v61 = vmul.f32 %v168_v58, %v149_v34  ;;  %276 = vmatpush.msra.mxu1 %v259_v45  ;;  %339 = vmatpush.msra.mxu3 %v259_v45 }
  0xca   :  { %v159_v22 = vadd.f32 1.1283791, %v158_v12 }
  0xcb   :  { %v170_v62 = vadd.f32 1.0, %v169_v61  ;;  %277 = vmatpush.msra.mxu1 %v258_v46  ;;  %340 = vmatpush.msra.mxu3 %v258_v46 }
  0xcc   :  { %v359_v63 = vpop.eup %358  ;;  %v160_v21 = vmul.f32 %v159_v22, %v516_v28 }
  0xcd   :  { %v132_v2 = vmul.f32 %v359_v63, %v130_v54  ;;  %360 = vrcp.f32 %v170_v62  ;;  %vm137_vm0 = vweird.f32 %v359_v63  ;;  %v182_v19 = vand.u32 2147483648, %v170_v62  ;;  %278 = vmatpush.msra.mxu1 %v257_v47  ;;  %341 = vmatpush.msra.mxu3 %v257_v47  ;;  %v252_v54 = vld [vmem:[#allocation5 + $0x10] sm:$0xff] }
  0xce   :  { %vm138_vm2 = vmor %vm136_vm1, %vm137_vm0  ;;  %v180_v24 = vand.u32 2147483647, %v170_v62  ;;  %vm176_vm5 = vweird.f32 %v170_v62 }
  0xcf   :  { %v133_v3 = vsub.f32 1.0, %v132_v2  ;;  %v183_v30 = vor.u32 1.1754944e-38, %v182_v19  ;;  %279 = vmatpush.msra.mxu1 %v256_v48  ;;  %342 = vmatpush.msra.mxu3 %v256_v48 }
  0xd0   :  { %vm181_vm7 = vcmp.eq.f32.partialorder %v180_v24, 8.507059e+37 }
  0xd1   :  { %v134_v7 = vmul.f32 %v359_v63, %v133_v3  ;;  %280 = vmatpush.msra.mxu1 %v255_v49  ;;  %343 = vmatpush.msra.mxu3 %v255_v49 }
  0xd3   :  { %v361_v9 = vpop.eup %360  ;;  %v135_v10 = vadd.f32 %v359_v63, %v134_v7  ;;  %281 = vmatpush.msra.mxu1 %v254_v51  ;;  %344 = vmatpush.msra.mxu3 %v254_v51 }
  0xd4   :  { %v172_v13 = vmul.f32 %v361_v9, %v170_v62  ;;  %vm177_vm4 = vweird.f32 %v361_v9 }
  0xd5   :  { %v139_v15 = vsel %vm138_vm2, %v359_v63, %v135_v10  ;;  %vm178_vm6 = vmor %vm176_vm5, %vm177_vm4  ;;  %282 = vmatpush.msra.mxu1 %v253_v52  ;;  %345 = vmatpush.msra.mxu3 %v253_v52 }
  0xd6   :  { %v144_v16 = vsel %vm141_vm3, %v143_v11, %v139_v15  ;;  %v173_v17 = vsub.f32 1.0, %v172_v13 }
  0xd7   :  { %v145_v18 = vmul.f32 %v144_v16, %v120_v14  ;;  %283 = vmatpush.msra.mxu1 %v252_v54  ;;  %346 = vmatpush.msra.mxu3 %v252_v54 }
  0xd8   :  { %v174_v23 = vmul.f32 %v361_v9, %v173_v17  ;;  %v355_v17 = vld [vmem:[%s553_s3] ss:$0 sm:$0xff] }
  0xd9   :  { %v315_v26 = vclamps-f32 %v145_v18, 1.0  ;;  %284 = vmatpush.msra.mxu1 %v251_v55  ;;  %347 = vmatpush.msra.mxu3 %v251_v55 }
  0xda   :  { %v175_v27 = vadd.f32 %v361_v9, %v174_v23  ;;  %v356_v23 = vld [vmem:[%s554_s4] ss:$0 sm:$0xff]  ;;  %s448_s4 = smov [#allocation7]  }
  0xdb   :  { %v188_v31 = vadd.f32 1.0, %v315_v26  ;;  %285 = vmatpush.msra.mxu1 %v250_v57  ;;  %348 = vmatpush.msra.mxu3 %v250_v57  ;;  %s299_s20 = sshll.u32 %s448_s4, 4  ;;  %s300_s20 = int_to_ptr.vmem [resolvable:$true] %s299_s20 }
  0xdc   :  { %v179_v32 = vsel %vm178_vm6, %v361_v9, %v175_v27 }
  0xdd   :  { %v184_v33 = vsel %vm181_vm7, %v183_v30, %v179_v32  ;;  %v522_v34 = vmul.f32 %v188_v31, %v104_v29 }
  0xde   :  { %v185_v35 = vmul.f32 %v184_v33, %v160_v21 }
  0xdf   :  { %192 = vadd.xlane.f32.xlu1 %v522_v34  ;;  %v198_v20 = vmul.f32 %v522_v34, %v522_v34 }
  0xe0   :  { %v316_v36 = vclamps-f32 %v185_v35, 1.0 }
  0xe2   :  { %v189_v38 = vadd.f32 1.0, %v316_v36 }
  0xe4   :  { %v526_v39 = vmul.f32 %v189_v38, %v105_v37 }
  0xe6   :  { %194 = vadd.xlane.f32.xlu0 %v526_v39  ;;  %v199_v28 = vmul.f32 %v526_v39, %v526_v39 }
  0xe7   :  { %200 = vadd.xlane.f32.xlu1 %v198_v20 }
  0xee   :  { %202 = vadd.xlane.f32.xlu0 %v199_v28 }
 0x152   :  { %v193_v50 = vpop.xlane.xlu1 %192 }
 0x153   :  { %v196_v53 = vmul.f32 0.015625, %v193_v50 }
 0x155   :  { %v206_v59 = vmul.f32 %v196_v53, %v196_v53  ;;  %v212_v15 = vsub.f32 %v522_v34, %v196_v53  ;;  %v357_v34 = vld [vmem:[%s556_s6] ss:$0 sm:$0xff] }
 0x159   :  { %v195_v56 = vpop.xlane.xlu0 %194 }
 0x15a   :  { %v201_v58 = vpop.xlane.xlu1 %200  ;;  %v197_v62 = vmul.f32 0.015625, %v195_v56 }
 0x15b   :  { %v204_v60 = vmul.f32 0.015625, %v201_v58 }
 0x15c   :  { %v207_v2 = vmul.f32 %v197_v62, %v197_v62  ;;  %v213_v30 = vsub.f32 %v526_v39, %v197_v62 }
 0x15d   :  { %v208_v61 = vsub.f32 %v204_v60, %v206_v59 }
 0x15f   :  { %v210_v63 = vmax.f32 %v208_v61, 0.0 }
 0x161   :  { %v214_v0 = vadd.f32 1e-05, %v210_v63  ;;  %v203_v1 = vpop.xlane.xlu0 %202 }
 0x162   :  { %v205_v3 = vmul.f32 0.015625, %v203_v1 }
 0x163   :  { %362 = vrsqrt.f32 %v214_v0  ;;  %vm222_vm9 = vweird.f32 %v214_v0 }
 0x164   :  { %v209_v4 = vsub.f32 %v205_v3, %v207_v2 }
 0x166   :  { %v211_v5 = vmax.f32 %v209_v4, 0.0 }
 0x168   :  { %v215_v6 = vadd.f32 1e-05, %v211_v5 }
 0x169   :  { %v363_v7 = vpop.eup %362 }
 0x16a   :  { %v217_v8 = vmul.f32 %v363_v7, %v214_v0  ;;  %364 = vrsqrt.f32 %v215_v6  ;;  %vm223_vm8 = vweird.f32 %v363_v7  ;;  %vm232_vm12 = vweird.f32 %v215_v6 }
 0x16b   :  { %vm224_vm10 = vmor %vm222_vm9, %vm223_vm8 }
 0x16c   :  { %v218_v9 = vmul.f32 %v363_v7, %v217_v8 }
 0x16e   :  { %v219_v10 = vmul.f32 0.5, %v218_v9 }
 0x170   :  { %v365_v11 = vpop.eup %364  ;;  %v220_v12 = vsub.f32 1.5, %v219_v10 }
 0x171   :  { %v227_v13 = vmul.f32 %v365_v11, %v215_v6  ;;  %vm233_vm11 = vweird.f32 %v365_v11 }
 0x172   :  { %v221_v14 = vmul.f32 %v363_v7, %v220_v12  ;;  %vm234_vm13 = vmor %vm232_vm12, %vm233_vm11 }
 0x173   :  { %v228_v16 = vmul.f32 %v365_v11, %v227_v13 }
 0x174   :  { %v225_v18 = vsel %vm224_vm10, %v363_v7, %v221_v14 }
 0x175   :  { %v229_v19 = vmul.f32 0.5, %v228_v16  ;;  %v236_v22 = vmul.f32 %v225_v18, %v212_v15 }
 0x177   :  { %v230_v24 = vsub.f32 1.5, %v229_v19  ;;  %v242_v26 = vmul.f32 %v355_v17, %v236_v22 }
 0x179   :  { %v248_v27 = vadd.f32 %v356_v23, %v242_v26  ;;  %v231_v29 = vmul.f32 %v365_v11, %v230_v24 }
 0x17b   :  { %286 = vmatmul.f32.vlgmr.msra.gmra.mxu1 %v248_v27  ;;  %v235_v31 = vsel %vm234_vm13, %v365_v11, %v231_v29 }
 0x17c   :  { %v237_v21 = vmul.f32 %v235_v31, %v213_v30 }
 0x17e   :  { %v243_v32 = vmul.f32 %v355_v17, %v237_v21 }
 0x180   :  { %v249_v33 = vadd.f32 %v356_v23, %v243_v32 }
 0x182   :  { %289 = vmatmul.f32.vlgmr.msra.gmra.mxu3 %v249_v33 }
 0x1f8   :  { %v287_v35 = vpop.f32.mrf.mxu1 }
 0x1f9   :  { %v288_v36 = vadd.f32 %v357_v34, %v287_v35 }
 0x1fb   :  { %293 = vst [vmem:[#allocation7] sm:$0xff] %v288_v36 }
 0x205   :  { %v290_v37 = vpop.f32.mrf.mxu3 }
 0x206   :  { %v291_v38 = vadd.f32 %v357_v34, %v290_v37 }
 0x208   :  { %294 = vst [vmem:[#allocation7 + $0x8] sm:$0xff] %v291_v38 }
 0x209   :  { %307 = dma.vmem_to_hbm [thread:$0]  %s300_s20, 256, %s302_s23, [#allocation4], %s445_s9, %s445_s9, %s446_s10  }
 0x20a   :  { %442 = dma.done.wait [#allocation4], 256  }
 0x20b   :  { %443 = vsyncadd [#allocation4], 4294967040 }
 0x20c   :  { %312 = vsyncpa [#allocation3], 1 }
 0x20d   :  { %313 = vsyncpa [#allocation6], 1 }
 0x20e   :  { %314 = vsyncpa [#allocation4], 1 }

// kernel: _image_proj_2d.1
= control target key start
LH: loop header
LB: loop body
LE: loop exit
PB: predicated region body
PF: predicated region fallthrough
CT: control target
= control target key end

     0   :  { %12 = vsyncpa [#allocation3], 0  ;;  %s550_s0 = inlined_call_operand.vmem [shape: f32[16,128], index: 0, kind: input, shape index: {}]   ;;  %s551_s1 = inlined_call_operand.hbm [shape: f32[128,128], index: 1, kind: input, shape index: {}]   ;;  %s552_s2 = inlined_call_operand.vmem [shape: f32[1,128], index: 2, kind: input, shape index: {}]   ;;  %s553_s3 = inlined_call_operand.vmem [shape: f32[1,128], index: 3, kind: input, shape index: {}]   ;;  %s554_s4 = inlined_call_operand.vmem [shape: f32[1,128], index: 4, kind: input, shape index: {}]   ;;  %s555_s5 = inlined_call_operand.hbm [shape: f32[128,128], index: 5, kind: input, shape index: {}]   ;;  %s556_s6 = inlined_call_operand.vmem [shape: f32[1,128], index: 6, kind: input, shape index: {}]   ;;  %s557_s7 = inlined_call_operand.hbm [shape: f32[16,128], index: 7, kind: output, shape index: {}]  }
   0x1   :  { %13 = vsyncpa [#allocation6], 0 }
   0x2   :  { %14 = vsyncpa [#allocation4], 0  ;;  %s21_s26 = sshll.u32 %s551_s1, 4  ;;  %s444_s27 = smov [#allocation2]   ;;  %s22_s26 = int_to_ptr.hbm [resolvable:$true] %s21_s26 }
   0x3   :  { %s23_s28 = sshll.u32 %s444_s27, 4  ;;  %s40_s8 = sshll.u32 %s555_s5, 4  ;;  %s24_s28 = int_to_ptr.vmem [resolvable:$true] %s23_s28  ;;  %s41_s8 = int_to_ptr.hbm [resolvable:$true] %s40_s8 }
   0x4   :  { %s445_s9 = smov 128   ;;  %s446_s10 = smov 8  }
   0x5   :  { %29 = dma.hbm_to_vmem [thread:$0]  %s22_s26, 2048, %s24_s28, [#allocation3], %s445_s9, %s445_s9, %s446_s10  }
   0x6   :  { %s447_s11 = smov [#allocation5]  }
   0x7   :  { %s42_s12 = sshll.u32 %s447_s11, 4  ;;  %s43_s12 = int_to_ptr.vmem [resolvable:$true] %s42_s12 }
   0x8   :  { %48 = dma.hbm_to_vmem [thread:$0]  %s41_s8, 2048, %s43_s12, [#allocation6], %s445_s9, %s445_s9, %s446_s10  }
   0x9   :  { %438 = dma.done.wait [#allocation3], 2048  }
   0xa   :  { %439 = vsyncadd [#allocation3], 4294965248 }
   0xb   :  { %440 = dma.done.wait [#allocation6], 2048  }
   0xc   :  { %441 = vsyncadd [#allocation6], 4294965248  ;;  %v76_v0 = vld [vmem:[#allocation2 + $0x78] sm:$0xff]  ;;  %v75_v1 = vld [vmem:[#allocation2 + $0x70] sm:$0xff]  ;;  %s301_s23 = sshll.u32 %s557_s7, 4  ;;  %s302_s23 = int_to_ptr.hbm [resolvable:$true] %s301_s23 }
   0xd   :  { %81 = vmatpush.msra.mxu0 %v76_v0  ;;  %317 = vmatpush.msra.mxu2 %v76_v0  ;;  %v74_v2 = vld [vmem:[#allocation2 + $0x68] sm:$0xff]  ;;  %v73_v3 = vld [vmem:[#allocation2 + $0x60] sm:$0xff]  ;;  %v72_v4 = vld [vmem:[#allocation2 + $0x58] sm:$0xff] }
   0xe   :  { %v71_v5 = vld [vmem:[#allocation2 + $0x50] sm:$0xff]  ;;  %v70_v6 = vld [vmem:[#allocation2 + $0x48] sm:$0xff]  ;;  %v69_v7 = vld [vmem:[#allocation2 + $0x40] sm:$0xff] }
   0xf   :  { %82 = vmatpush.msra.mxu0 %v75_v1  ;;  %318 = vmatpush.msra.mxu2 %v75_v1  ;;  %v68_v8 = vld [vmem:[#allocation2 + $0x38] sm:$0xff]  ;;  %v67_v9 = vld [vmem:[#allocation2 + $0x30] sm:$0xff]  ;;  %v66_v10 = vld [vmem:[#allocation2 + $0x28] sm:$0xff] }
  0x10   :  { %v65_v11 = vld [vmem:[#allocation2 + $0x20] sm:$0xff]  ;;  %v64_v12 = vld [vmem:[#allocation2 + $0x18] sm:$0xff]  ;;  %v63_v13 = vld [vmem:[#allocation2 + $0x10] sm:$0xff] }
  0x11   :  { %83 = vmatpush.msra.mxu0 %v74_v2  ;;  %319 = vmatpush.msra.mxu2 %v74_v2  ;;  %v62_v14 = vld [vmem:[#allocation2 + $0x8] sm:$0xff]  ;;  %v61_v15 = vld [vmem:[#allocation2] sm:$0xff] }
  0x12   :  { %v59_v16 = vld [vmem:[%s550_s0] sm:$0xff]  ;;  %v60_v17 = vld [vmem:[%s550_s0 + $0x8] sm:$0xff] }
  0x13   :  { %84 = vmatpush.msra.mxu0 %v73_v3  ;;  %320 = vmatpush.msra.mxu2 %v73_v3  ;;  %v354_v18 = vld [vmem:[%s552_s2] ss:$0 sm:$0xff] }
  0x15   :  { %85 = vmatpush.msra.mxu0 %v72_v4  ;;  %321 = vmatpush.msra.mxu2 %v72_v4 }
  0x17   :  { %86 = vmatpush.msra.mxu0 %v71_v5  ;;  %322 = vmatpush.msra.mxu2 %v71_v5 }
  0x19   :  { %87 = vmatpush.msra.mxu0 %v70_v6  ;;  %323 = vmatpush.msra.mxu2 %v70_v6 }
  0x1b   :  { %88 = vmatpush.msra.mxu0 %v69_v7  ;;  %324 = vmatpush.msra.mxu2 %v69_v7 }
  0x1d   :  { %89 = vmatpush.msra.mxu0 %v68_v8  ;;  %325 = vmatpush.msra.mxu2 %v68_v8 }
  0x1f   :  { %90 = vmatpush.msra.mxu0 %v67_v9  ;;  %326 = vmatpush.msra.mxu2 %v67_v9 }
  0x21   :  { %91 = vmatpush.msra.mxu0 %v66_v10  ;;  %327 = vmatpush.msra.mxu2 %v66_v10 }
  0x23   :  { %92 = vmatpush.msra.mxu0 %v65_v11  ;;  %328 = vmatpush.msra.mxu2 %v65_v11 }
  0x25   :  { %93 = vmatpush.msra.mxu0 %v64_v12  ;;  %329 = vmatpush.msra.mxu2 %v64_v12 }
  0x27   :  { %94 = vmatpush.msra.mxu0 %v63_v13  ;;  %330 = vmatpush.msra.mxu2 %v63_v13 }
  0x29   :  { %95 = vmatpush.msra.mxu0 %v62_v14  ;;  %331 = vmatpush.msra.mxu2 %v62_v14 }
  0x2b   :  { %96 = vmatpush.msra.mxu0 %v61_v15  ;;  %332 = vmatpush.msra.mxu2 %v61_v15 }
  0x2c   :  { %97 = vmatmul.f32.vlgmr.msra.gmra.mxu0 %v59_v16  ;;  %100 = vmatmul.f32.vlgmr.msra.gmra.mxu2 %v60_v17 }
  0xa9   :  { %v98_v19 = vpop.f32.mrf.mxu0 }
  0xaa   :  { %v510_v20 = vadd.f32 %v354_v18, %v98_v19 }
  0xac   :  { %v106_v21 = vmul.f32 0.70710677, %v510_v20 }
  0xae   :  { %v108_v22 = vmul.f32 %v106_v21, %v106_v21 }
  0xaf   :  { %v101_v23 = vpop.f32.mrf.mxu2 }
  0xb0   :  { %v109_v24 = vmin.f32 %v108_v22, 16.0  ;;  %v513_v25 = vadd.f32 %v354_v18, %v101_v23 }
  0xb2   :  { %v110_v26 = vmul.f32 2.1237322e-06, %v109_v24  ;;  %v121_v27 = vmul.f32 3.8918573e-05, %v109_v24  ;;  %v516_v28 = vmul.f32 0.70710677, %v513_v25 }
  0xb4   :  { %v111_v29 = vadd.f32 0.00028619796, %v110_v26  ;;  %v122_v30 = vadd.f32 0.001143296, %v121_v27  ;;  %v148_v31 = vmul.f32 %v516_v28, %v516_v28 }
  0xb6   :  { %v112_v32 = vmul.f32 %v111_v29, %v109_v24  ;;  %v123_v33 = vmul.f32 %v122_v30, %v109_v24  ;;  %v149_v34 = vmin.f32 %v148_v31, 16.0  ;;  %v104_v29 = vmul.f32 0.5, %v510_v20 }
  0xb8   :  { %v124_v35 = vadd.f32 0.014752088, %v123_v33  ;;  %v113_v36 = vadd.f32 0.0036580483, %v112_v32  ;;  %v150_v37 = vmul.f32 2.1237322e-06, %v149_v34 }
  0xb9   :  { %v161_v38 = vmul.f32 3.8918573e-05, %v149_v34 }
  0xba   :  { %v125_v39 = vmul.f32 %v124_v35, %v109_v24  ;;  %v151_v40 = vadd.f32 0.00028619796, %v150_v37  ;;  %v114_v43 = vmul.f32 %v113_v36, %v109_v24  ;;  %v105_v37 = vmul.f32 0.5, %v513_v25  ;;  %v263_v25 = vld [vmem:[#allocation5 + $0x68] sm:$0xff] }
  0xbb   :  { %v162_v41 = vadd.f32 0.001143296, %v161_v38 }
  0xbc   :  { %v126_v42 = vadd.f32 0.112945676, %v125_v39  ;;  %v152_v44 = vmul.f32 %v151_v40, %v149_v34  ;;  %v115_v50 = vadd.f32 0.05243302, %v114_v43  ;;  %v265_v40 = vld [vmem:[#allocation5 + $0x78] sm:$0xff] }
  0xbd   :  { %v163_v45 = vmul.f32 %v162_v41, %v149_v34  ;;  %270 = vmatpush.msra.mxu1 %v265_v40  ;;  %333 = vmatpush.msra.mxu3 %v265_v40  ;;  %v264_v41 = vld [vmem:[#allocation5 + $0x70] sm:$0xff]  ;;  %v261_v43 = vld [vmem:[#allocation5 + $0x58] sm:$0xff] }
  0xbe   :  { %v127_v46 = vmul.f32 %v126_v42, %v109_v24  ;;  %v153_v49 = vadd.f32 0.0036580483, %v152_v44  ;;  %v116_v56 = vmul.f32 %v115_v50, %v109_v24  ;;  %v262_v42 = vld [vmem:[#allocation5 + $0x60] sm:$0xff]  ;;  %v260_v44 = vld [vmem:[#allocation5 + $0x50] sm:$0xff] }
  0xbf   :  { %v164_v47 = vadd.f32 0.014752088, %v163_v45  ;;  %271 = vmatpush.msra.mxu1 %v264_v41  ;;  %334 = vmatpush.msra.mxu3 %v264_v41  ;;  %v259_v45 = vld [vmem:[#allocation5 + $0x48] sm:$0xff] }
  0xc0   :  { %v128_v48 = vadd.f32 0.4994258, %v127_v46  ;;  %v154_v55 = vmul.f32 %v153_v49, %v149_v34  ;;  %v117_v60 = vadd.f32 0.18741608, %v116_v56  ;;  %v258_v46 = vld [vmem:[#allocation5 + $0x40] sm:$0xff]  ;;  %v255_v49 = vld [vmem:[#allocation5 + $0x28] sm:$0xff] }
  0xc1   :  { %v165_v51 = vmul.f32 %v164_v47, %v149_v34  ;;  %272 = vmatpush.msra.mxu1 %v263_v25  ;;  %335 = vmatpush.msra.mxu3 %v263_v25  ;;  %v257_v47 = vld [vmem:[#allocation5 + $0x38] sm:$0xff] }
  0xc2   :  { %v129_v52 = vmul.f32 %v128_v48, %v109_v24  ;;  %v155_v59 = vadd.f32 0.05243302, %v154_v55  ;;  %v118_v1 = vmul.f32 %v117_v60, %v109_v24  ;;  %v256_v48 = vld [vmem:[#allocation5 + $0x30] sm:$0xff]  ;;  %v251_v55 = vld [vmem:[#allocation5 + $0x8] sm:$0xff] }
  0xc3   :  { %v166_v53 = vadd.f32 0.112945676, %v165_v51  ;;  %273 = vmatpush.msra.mxu1 %v262_v42  ;;  %336 = vmatpush.msra.mxu3 %v262_v42  ;;  %v254_v51 = vld [vmem:[#allocation5 + $0x20] sm:$0xff] }
  0xc4   :  { %v130_v54 = vadd.f32 1.0, %v129_v52  ;;  %v156_v0 = vmul.f32 %v155_v59, %v149_v34  ;;  %v119_v6 = vadd.f32 1.1283791, %v118_v1  ;;  %v253_v52 = vld [vmem:[#allocation5 + $0x18] sm:$0xff] }
  0xc5   :  { %v167_v57 = vmul.f32 %v166_v53, %v149_v34  ;;  %274 = vmatpush.msra.mxu1 %v261_v43  ;;  %337 = vmatpush.msra.mxu3 %v261_v43 }
  0xc6   :  { %358 = vrcp.f32 %v130_v54  ;;  %v142_v4 = vand.u32 2147483648, %v130_v54  ;;  %v157_v5 = vadd.f32 0.18741608, %v156_v0  ;;  %v140_v8 = vand.u32 2147483647, %v130_v54 }
  0xc7   :  { %v168_v58 = vadd.f32 0.4994258, %v167_v57  ;;  %vm136_vm1 = vweird.f32 %v130_v54  ;;  %v120_v14 = vmul.f32 %v119_v6, %v106_v21  ;;  %275 = vmatpush.msra.mxu1 %v260_v44  ;;  %338 = vmatpush.msra.mxu3 %v260_v44  ;;  %v250_v57 = vld [vmem:[#allocation5] sm:$0xff] }
  0xc8   :  { %v143_v11 = vor.u32 1.1754944e-38, %v142_v4  ;;  %v158_v12 = vmul.f32 %v157_v5, %v149_v34  ;;  %vm141_vm3 = vcmp.eq.f32.partialorder %v140_v8, 8.507059e+37 }
  0xc9   :  { %v169_v61 = vmul.f32 %v168_v58, %v149_v34  ;;  %276 = vmatpush.msra.mxu1 %v259_v45  ;;  %339 = vmatpush.msra.mxu3 %v259_v45 }
  0xca   :  { %v159_v22 = vadd.f32 1.1283791, %v158_v12 }
  0xcb   :  { %v170_v62 = vadd.f32 1.0, %v169_v61  ;;  %277 = vmatpush.msra.mxu1 %v258_v46  ;;  %340 = vmatpush.msra.mxu3 %v258_v46 }
  0xcc   :  { %v359_v63 = vpop.eup %358  ;;  %v160_v21 = vmul.f32 %v159_v22, %v516_v28 }
  0xcd   :  { %v132_v2 = vmul.f32 %v359_v63, %v130_v54  ;;  %360 = vrcp.f32 %v170_v62  ;;  %vm137_vm0 = vweird.f32 %v359_v63  ;;  %v182_v19 = vand.u32 2147483648, %v170_v62  ;;  %278 = vmatpush.msra.mxu1 %v257_v47  ;;  %341 = vmatpush.msra.mxu3 %v257_v47  ;;  %v252_v54 = vld [vmem:[#allocation5 + $0x10] sm:$0xff] }
  0xce   :  { %vm138_vm2 = vmor %vm136_vm1, %vm137_vm0  ;;  %v180_v24 = vand.u32 2147483647, %v170_v62  ;;  %vm176_vm5 = vweird.f32 %v170_v62 }
  0xcf   :  { %v133_v3 = vsub.f32 1.0, %v132_v2  ;;  %v183_v30 = vor.u32 1.1754944e-38, %v182_v19  ;;  %279 = vmatpush.msra.mxu1 %v256_v48  ;;  %342 = vmatpush.msra.mxu3 %v256_v48 }
  0xd0   :  { %vm181_vm7 = vcmp.eq.f32.partialorder %v180_v24, 8.507059e+37 }
  0xd1   :  { %v134_v7 = vmul.f32 %v359_v63, %v133_v3  ;;  %280 = vmatpush.msra.mxu1 %v255_v49  ;;  %343 = vmatpush.msra.mxu3 %v255_v49 }
  0xd3   :  { %v361_v9 = vpop.eup %360  ;;  %v135_v10 = vadd.f32 %v359_v63, %v134_v7  ;;  %281 = vmatpush.msra.mxu1 %v254_v51  ;;  %344 = vmatpush.msra.mxu3 %v254_v51 }
  0xd4   :  { %v172_v13 = vmul.f32 %v361_v9, %v170_v62  ;;  %vm177_vm4 = vweird.f32 %v361_v9 }
  0xd5   :  { %v139_v15 = vsel %vm138_vm2, %v359_v63, %v135_v10  ;;  %vm178_vm6 = vmor %vm176_vm5, %vm177_vm4  ;;  %282 = vmatpush.msra.mxu1 %v253_v52  ;;  %345 = vmatpush.msra.mxu3 %v253_v52 }
  0xd6   :  { %v144_v16 = vsel %vm141_vm3, %v143_v11, %v139_v15  ;;  %v173_v17 = vsub.f32 1.0, %v172_v13 }
  0xd7   :  { %v145_v18 = vmul.f32 %v144_v16, %v120_v14  ;;  %283 = vmatpush.msra.mxu1 %v252_v54  ;;  %346 = vmatpush.msra.mxu3 %v252_v54 }
  0xd8   :  { %v174_v23 = vmul.f32 %v361_v9, %v173_v17  ;;  %v355_v17 = vld [vmem:[%s553_s3] ss:$0 sm:$0xff] }
  0xd9   :  { %v315_v26 = vclamps-f32 %v145_v18, 1.0  ;;  %284 = vmatpush.msra.mxu1 %v251_v55  ;;  %347 = vmatpush.msra.mxu3 %v251_v55 }
  0xda   :  { %v175_v27 = vadd.f32 %v361_v9, %v174_v23  ;;  %v356_v23 = vld [vmem:[%s554_s4] ss:$0 sm:$0xff]  ;;  %s448_s4 = smov [#allocation7]  }
  0xdb   :  { %v188_v31 = vadd.f32 1.0, %v315_v26  ;;  %285 = vmatpush.msra.mxu1 %v250_v57  ;;  %348 = vmatpush.msra.mxu3 %v250_v57  ;;  %s299_s20 = sshll.u32 %s448_s4, 4  ;;  %s300_s20 = int_to_ptr.vmem [resolvable:$true] %s299_s20 }
  0xdc   :  { %v179_v32 = vsel %vm178_vm6, %v361_v9, %v175_v27 }
  0xdd   :  { %v184_v33 = vsel %vm181_vm7, %v183_v30, %v179_v32  ;;  %v522_v34 = vmul.f32 %v188_v31, %v104_v29 }
  0xde   :  { %v185_v35 = vmul.f32 %v184_v33, %v160_v21 }
  0xdf   :  { %192 = vadd.xlane.f32.xlu1 %v522_v34  ;;  %v198_v20 = vmul.f32 %v522_v34, %v522_v34 }
  0xe0   :  { %v316_v36 = vclamps-f32 %v185_v35, 1.0 }
  0xe2   :  { %v189_v38 = vadd.f32 1.0, %v316_v36 }
  0xe4   :  { %v526_v39 = vmul.f32 %v189_v38, %v105_v37 }
  0xe6   :  { %194 = vadd.xlane.f32.xlu0 %v526_v39  ;;  %v199_v28 = vmul.f32 %v526_v39, %v526_v39 }
  0xe7   :  { %200 = vadd.xlane.f32.xlu1 %v198_v20 }
  0xee   :  { %202 = vadd.xlane.f32.xlu0 %v199_v28 }
 0x152   :  { %v193_v50 = vpop.xlane.xlu1 %192 }
 0x153   :  { %v196_v53 = vmul.f32 0.015625, %v193_v50 }
 0x155   :  { %v206_v59 = vmul.f32 %v196_v53, %v196_v53  ;;  %v212_v15 = vsub.f32 %v522_v34, %v196_v53  ;;  %v357_v34 = vld [vmem:[%s556_s6] ss:$0 sm:$0xff] }
 0x159   :  { %v195_v56 = vpop.xlane.xlu0 %194 }
 0x15a   :  { %v201_v58 = vpop.xlane.xlu1 %200  ;;  %v197_v62 = vmul.f32 0.015625, %v195_v56 }
 0x15b   :  { %v204_v60 = vmul.f32 0.015625, %v201_v58 }
 0x15c   :  { %v207_v2 = vmul.f32 %v197_v62, %v197_v62  ;;  %v213_v30 = vsub.f32 %v526_v39, %v197_v62 }
 0x15d   :  { %v208_v61 = vsub.f32 %v204_v60, %v206_v59 }
 0x15f   :  { %v210_v63 = vmax.f32 %v208_v61, 0.0 }
 0x161   :  { %v214_v0 = vadd.f32 1e-05, %v210_v63  ;;  %v203_v1 = vpop.xlane.xlu0 %202 }
 0x162   :  { %v205_v3 = vmul.f32 0.015625, %v203_v1 }
 0x163   :  { %362 = vrsqrt.f32 %v214_v0  ;;  %vm222_vm9 = vweird.f32 %v214_v0 }
 0x164   :  { %v209_v4 = vsub.f32 %v205_v3, %v207_v2 }
 0x166   :  { %v211_v5 = vmax.f32 %v209_v4, 0.0 }
 0x168   :  { %v215_v6 = vadd.f32 1e-05, %v211_v5 }
 0x169   :  { %v363_v7 = vpop.eup %362 }
 0x16a   :  { %v217_v8 = vmul.f32 %v363_v7, %v214_v0  ;;  %364 = vrsqrt.f32 %v215_v6  ;;  %vm223_vm8 = vweird.f32 %v363_v7  ;;  %vm232_vm12 = vweird.f32 %v215_v6 }
 0x16b   :  { %vm224_vm10 = vmor %vm222_vm9, %vm223_vm8 }
 0x16c   :  { %v218_v9 = vmul.f32 %v363_v7, %v217_v8 }
 0x16e   :  { %v219_v10 = vmul.f32 0.5, %v218_v9 }
 0x170   :  { %v365_v11 = vpop.eup %364  ;;  %v220_v12 = vsub.f32 1.5, %v219_v10 }
 0x171   :  { %v227_v13 = vmul.f32 %v365_v11, %v215_v6  ;;  %vm233_vm11 = vweird.f32 %v365_v11 }
 0x172   :  { %v221_v14 = vmul.f32 %v363_v7, %v220_v12  ;;  %vm234_vm13 = vmor %vm232_vm12, %vm233_vm11 }
 0x173   :  { %v228_v16 = vmul.f32 %v365_v11, %v227_v13 }
 0x174   :  { %v225_v18 = vsel %vm224_vm10, %v363_v7, %v221_v14 }
 0x175   :  { %v229_v19 = vmul.f32 0.5, %v228_v16  ;;  %v236_v22 = vmul.f32 %v225_v18, %v212_v15 }
 0x177   :  { %v230_v24 = vsub.f32 1.5, %v229_v19  ;;  %v242_v26 = vmul.f32 %v355_v17, %v236_v22 }
 0x179   :  { %v248_v27 = vadd.f32 %v356_v23, %v242_v26  ;;  %v231_v29 = vmul.f32 %v365_v11, %v230_v24 }
 0x17b   :  { %286 = vmatmul.f32.vlgmr.msra.gmra.mxu1 %v248_v27  ;;  %v235_v31 = vsel %vm234_vm13, %v365_v11, %v231_v29 }
 0x17c   :  { %v237_v21 = vmul.f32 %v235_v31, %v213_v30 }
 0x17e   :  { %v243_v32 = vmul.f32 %v355_v17, %v237_v21 }
 0x180   :  { %v249_v33 = vadd.f32 %v356_v23, %v243_v32 }
 0x182   :  { %289 = vmatmul.f32.vlgmr.msra.gmra.mxu3 %v249_v33 }
 0x1f8   :  { %v287_v35 = vpop.f32.mrf.mxu1 }
 0x1f9   :  { %v288_v36 = vadd.f32 %v357_v34, %v287_v35 }
 0x1fb   :  { %293 = vst [vmem:[#allocation7] sm:$0xff] %v288_v36 }
 0x205   :  { %v290_v37 = vpop.f32.mrf.mxu3 }
 0x206   :  { %v291_v38 = vadd.f32 %v357_v34, %v290_v37 }
 0x208   :  { %294 = vst [vmem:[#allocation7 + $0x8] sm:$0xff] %v291_v38 }
 0x209   :  { %307 = dma.vmem_to_hbm [thread:$0]  %s300_s20, 256, %s302_s23, [#allocation4], %s445_s9, %s445_s9, %s446_s10  }
 0x20a   :  { %442 = dma.done.wait [#allocation4], 256  }
 0x20b   :  { %443 = vsyncadd [#allocation4], 4294967040 }
 0x20c   :  { %312 = vsyncpa [#allocation3], 1 }
 0x20d   :  { %313 = vsyncpa [#allocation6], 1 }
 0x20e   :  { %314 = vsyncpa [#allocation4], 1 }

</bundles_post_ra>
